<compile_context>
chip_gen: v7x
topology: tpu7x:2x2x1
jax: 0.10.0
libtpu: 0.0.40
codegen_flags: <defaults>
</compile_context>

<pallas_src>
import functools

import numpy as np
import jax
import jax.numpy as jnp
from jax.experimental import pallas as pl
from jax.experimental.pallas import tpu as pltpu


# ----------------------------- Pallas kernel ------------------------------ #
def textcnn_kernel(filter_sizes, num_filters,
                   ids_ref, table_ref, wp_ref, wfc_ref, aux_ref, out_ref):
    """Fused embed + conv(all widths) + relu + max-pool + fc for one batch block.

    ids_ref   : (Bblk, S)      int32 token ids
    table_ref : (Vpad, E)      embedding table (vocab padded to mult of 8)
    wp_ref    : (E, 128)       all conv taps packed along lanes (zero padded)
    wfc_ref   : (128, 128)     fc weight scattered to pooled-feature lanes
    aux_ref   : (8, 128)       row0 = conv bias slab, row1 = fc bias (padded)
    out_ref   : (Bblk, 128)    lane-dense logits (classes in lanes 0..C-1)
    """
    F = num_filters
    bblk, S = ids_ref.shape
    Vp, E = table_ref.shape
    lanes = wp_ref.shape[1]
    kmax = max(filter_sizes)
    cdt = wp_ref.dtype

    # Lane-slab offsets per filter width (compile-time constants).
    cols, c = [], 0
    for k in filter_sizes:
        cols.append(c)
        c += k * F

    # ---- fused embedding gather: one-hot matmul on the MXU (no HBM emb) ----
    # TODO(synk): at production vocab sizes replace the one-hot matmul with a
    # scalar-prefetched per-row DMA gather from an HBM-resident table.
    ids = ids_ref[...]                                               # (Bblk, S)
    viota = jax.lax.broadcasted_iota(jnp.int32, (1, 1, Vp), 2)
    onehot = (ids[:, :, None] == viota).astype(table_ref.dtype)      # (Bblk,S,Vp)
    emb = jnp.dot(onehot.reshape(bblk * S, Vp), table_ref[...],
                  preferred_element_type=jnp.float32)                # (N, E)

    # ---- every tap of every width: one lane-dense MXU matmul ----
    y = jnp.dot(emb.astype(cdt), wp_ref[...],
                preferred_element_type=jnp.float32)                  # (N, 128)
    y = y.reshape(bblk, S, lanes)

    lane = jax.lax.broadcasted_iota(jnp.int32, (1, 1, lanes), 2)

    # ---- stage 1: align tap j onto tap 0 with time-axis rolls (XLU slot) ----
    # z[t, col_k + j*F + f] = y[t + j, col_k + j*F + f]
    z = jnp.zeros_like(y)
    for j in range(kmax):
        yj = y if j == 0 else pltpu.roll(y, shift=S - j, axis=1)     # y[t + j]
        mj = None
        for col, k in zip(cols, filter_sizes):
            if j < k:
                cur = (lane >= col + j * F) & (lane < col + (j + 1) * F)
                mj = cur if mj is None else (mj | cur)
        z = z + jnp.where(mj, yj, 0.0)

    # ---- mask invalid trailing time rows (t > S - k) with -inf ----
    tpos = jax.lax.broadcasted_iota(jnp.int32, (1, S, lanes), 1)
    klane = jnp.full((1, 1, lanes), 1, jnp.int32)
    for col, k in zip(cols, filter_sizes):
        in_slab = (lane >= col) & (lane < col + k * F)
        klane = jnp.where(in_slab, k, klane)
    z = jnp.where(tpos <= (S - klane), z, -jnp.inf)

    # ---- stage 2: sum the k taps of each width with lane-axis rolls (XLU) ----
    # acc at first-block lanes (col_k .. col_k+F) = sum_j z[:, :, col_k + j*F + f]
    acc = z
    for j in range(1, kmax):
        mj = None
        for col, k in zip(cols, filter_sizes):
            if k > j:
                cur = (lane >= col) & (lane < col + F)
                mj = cur if mj is None else (mj | cur)
        zr = pltpu.roll(z, shift=lanes - j * F, axis=2)              # z[..., l + j*F]
        acc = acc + jnp.where(mj, zr, 0.0)

    # ---- max over time, then bias + relu (monotone, commutes with the max) ----
    pooled = jnp.max(acc, axis=1)                                    # (Bblk, 128)
    h = jnp.maximum(pooled + aux_ref[0:1, :], 0.0)

    # ---- fc as one lane-dense MXU matmul; unused lanes carry zero weights ----
    out_ref[...] = (jnp.dot(h, wfc_ref[...], preferred_element_type=jnp.float32)
                    + aux_ref[1:2, :])


# --------------------------- one-time param pack --------------------------- #
def pack_params(params, filter_sizes, num_filters, embed, num_classes,
                lane_width=128, compute_dtype=jnp.float32):
    """One-time repack of PyTorch-layout params into the kernel's fused layout."""
    F = num_filters
    total = sum(k * F for k in filter_sizes)
    assert total <= lane_width, "conv taps must fit one lane-dense vreg width"

    # Conv taps packed along lanes: packed[:, col_k + j*F + f] = w_k[f, j, :].
    w_cols = []
    for k in filter_sizes:
        w = params[f"conv{k}_w"]                                  # (F, k, E)
        w_cols.append(jnp.transpose(w, (2, 1, 0)).reshape(embed, k * F))
    w_packed = jnp.concatenate(w_cols, axis=1)
    w_packed = jnp.pad(w_packed, ((0, 0), (0, lane_width - total)))

    # Embedding table, vocab padded to a multiple of 8 sublanes.
    table = params["embedding"]
    n_vocab = table.shape[0]
    vpad = ((n_vocab + 7) // 8) * 8
    table = jnp.pad(table, ((0, vpad - n_vocab), (0, 0)))

    # FC weight scattered to the lanes where pooled features land (first F lanes
    # of each width's slab); zeros elsewhere -> single lane-dense matmul.
    wfc = np.zeros((lane_width, lane_width), np.float32)
    aux = np.zeros((8, lane_width), np.float32)
    aux[1, :num_classes] = np.asarray(params["fc_b"], np.float32)
    fc_w_t = np.asarray(params["fc_w"], np.float32).T              # (K*F, C)
    col = 0
    for idx, k in enumerate(filter_sizes):
        wfc[col:col + F, :num_classes] = fc_w_t[idx * F:(idx + 1) * F, :]
        aux[0, col:col + F] = np.asarray(params[f"conv{k}_b"], np.float32)
        col += k * F

    return {
        "table": table.astype(compute_dtype),
        "w_packed": w_packed.astype(compute_dtype),
        "fc_w_pad": jnp.asarray(wfc),
        "aux": jnp.asarray(aux),
        "pad_id": n_vocab - 1,
        "num_classes": num_classes,
    }


# ------------------------------- wrapper ----------------------------------- #
def _choose_batch_block(B, cap=128):
    """Biggest legal batch block: (bb % 8 == 0 or bb == padded B), capped so a
    large batch still gets >= 2 grid steps (v7x has 2 TensorCores)."""
    if B <= 16:
        return B                      # toy sizes: one block (grid of 1)
    half = -(-B // 2)
    return min(cap, ((half + 7) // 8) * 8)


def textcnn_forward(token_ids, packed, filter_sizes, num_filters,
                    *, batch_block_cap=128):
    B, S = token_ids.shape
    assert batch_block_cap % 8 == 0
    bb = _choose_batch_block(B, batch_block_cap)
    Bp = ((B + bb - 1) // bb) * bb                   # pad batch -> any B is legal
    token_ids = token_ids.astype(jnp.int32)
    if Bp != B:
        token_ids = jnp.pad(token_ids, ((0, Bp - B), (0, 0)),
                            constant_values=packed["pad_id"])
    lanes = packed["w_packed"].shape[1]
    grid = (Bp // bb,)

    kernel = functools.partial(textcnn_kernel, tuple(filter_sizes), num_filters)
    out = pl.pallas_call(
        kernel,
        out_shape=jax.ShapeDtypeStruct((Bp, lanes), jnp.float32),
        grid_spec=pltpu.PrefetchScalarGridSpec(
            num_scalar_prefetch=0,
            grid=grid,
            in_specs=[
                pl.BlockSpec((bb, S), lambda i: (i, 0)),                 # token ids
                pl.BlockSpec(packed["table"].shape, lambda i: (0, 0)),   # emb table
                pl.BlockSpec(packed["w_packed"].shape, lambda i: (0, 0)),
                pl.BlockSpec(packed["fc_w_pad"].shape, lambda i: (0, 0)),
                pl.BlockSpec(packed["aux"].shape, lambda i: (0, 0)),
            ],
            out_specs=pl.BlockSpec((bb, lanes), lambda i: (i, 0)),       # lane-dense
        ),
        compiler_params=pltpu.CompilerParams(
            dimension_semantics=("parallel",)),
    )(token_ids, packed["table"], packed["w_packed"],
      packed["fc_w_pad"], packed["aux"])
    return out[:B, :packed["num_classes"]]


# --------------------------- pure-JAX reference ---------------------------- #
def textcnn_reference(token_ids, params, filter_sizes):
    emb = jnp.take(params["embedding"], token_ids, axis=0)     # (B, S, E)
    B, S, E = emb.shape
    feats = []
    for k in filter_sizes:
        w = params[f"conv{k}_w"]                               # (F, k, E)
        b = params[f"conv{k}_b"]
        L = S - k + 1
        windows = jnp.stack([emb[:, j:j + L, :] for j in range(k)], axis=2)
        scores = jnp.einsum("blke,fke->blf", windows, w) + b
        scores = jnp.maximum(scores, 0.0)
        feats.append(jnp.max(scores, axis=1))
    feat = jnp.concatenate(feats, axis=1)
    return feat @ params["fc_w"].T + params["fc_b"]


# ------------------------------ param init --------------------------------- #
def init_params(key, n_vocab, embed, num_filters, filter_sizes, num_classes):
    keys = jax.random.split(key, 3 + 2 * len(filter_sizes))
    params = {}
    emb_table = 0.1 * jax.random.normal(keys[0], (n_vocab, embed), jnp.float32)
    # padding_idx = n_vocab - 1: that embedding row is zero.
    emb_table = emb_table.at[n_vocab - 1].set(0.0)
    params["embedding"] = emb_table
    for i, k in enumerate(filter_sizes):
        params[f"conv{k}_w"] = 0.1 * jax.random.normal(
            keys[1 + 2 * i], (num_filters, k, embed), jnp.float32)
        params[f"conv{k}_b"] = 0.1 * jax.random.normal(
            keys[2 + 2 * i], (num_filters,), jnp.float32)
    in_feat = num_filters * len(filter_sizes)
    params["fc_w"] = 0.1 * jax.random.normal(
        keys[-2], (num_classes, in_feat), jnp.float32)
    params["fc_b"] = 0.1 * jax.random.normal(
        keys[-1], (num_classes,), jnp.float32)
    return params


if __name__ == "__main__":
    # Small config consistent with the module's forward.
    n_vocab = 50
    embed = 32
    num_filters = 8
    filter_sizes = (2, 3, 4)
    num_classes = 4
    batch = 2
    seq_len = 16

    key = jax.random.PRNGKey(0)
    pkey, xkey = jax.random.split(key)
    params = init_params(pkey, n_vocab, embed, num_filters, filter_sizes,
                         num_classes)

    token_ids = jax.random.randint(xkey, (batch, seq_len), 0, n_vocab,
                                   dtype=jnp.int32)
    seq_lens = jnp.full((batch,), seq_len, dtype=jnp.int32)
    x = (token_ids, seq_lens)   # forward uses x[0], matching the PyTorch module

    ref = textcnn_reference(x[0], params, filter_sizes)

    # f32 MXU path: matches the f32 reference tightly.
    packed_f32 = pack_params(params, filter_sizes, num_filters, embed,
                             num_classes, compute_dtype=jnp.float32)
    out_f32 = jax.block_until_ready(
        textcnn_forward(x[0], packed_f32, filter_sizes, num_filters))
    assert out_f32.shape == (batch, num_classes)
    assert jnp.allclose(out_f32, ref, atol=1e-4, rtol=1e-4), (out_f32, ref)

    # bf16 storage/compute path (halves table/conv-weight bytes, 2x MXU rate).
    packed_bf16 = pack_params(params, filter_sizes, num_filters, embed,
                              num_classes, compute_dtype=jnp.bfloat16)
    out_bf16 = jax.block_until_ready(
        textcnn_forward(x[0], packed_bf16, filter_sizes, num_filters))
    assert jnp.allclose(out_bf16, ref, atol=2e-2, rtol=2e-2), (out_bf16, ref)

    print("KERNEL_OK")
</pallas_src>

<mosaic_0001>
module attributes {stable_mosaic.version = 11 : i64} {
  func.func @textcnn_kernel(%arg0: i32, %arg1: memref<2x16xi32, #tpu.memory_space<vmem>>, %arg2: memref<56x32xf32, #tpu.memory_space<vmem>>, %arg3: memref<32x128xf32, #tpu.memory_space<vmem>>, %arg4: memref<128x128xf32, #tpu.memory_space<vmem>>, %arg5: memref<8x128xf32, #tpu.memory_space<vmem>>, %arg6: memref<2x128xf32, #tpu.memory_space<vmem>>) attributes {dimension_semantics = [#tpu.dimension_semantics<parallel>], iteration_bounds = array<i64: 1>, scalar_prefetch = 0 : i64, scratch_operands = 0 : i64, tpu.core_type = #tpu.core_type<tc>, window_params = [{transform_indices = @transform_0, window_bounds = array<i64: 2, 16>}, {pipeline_mode = #tpu.pipeline_mode<synchronous>, transform_indices = @transform_1, window_bounds = array<i64: 56, 32>}, {pipeline_mode = #tpu.pipeline_mode<synchronous>, transform_indices = @transform_2, window_bounds = array<i64: 32, 128>}, {pipeline_mode = #tpu.pipeline_mode<synchronous>, transform_indices = @transform_3, window_bounds = array<i64: 128, 128>}, {pipeline_mode = #tpu.pipeline_mode<synchronous>, transform_indices = @transform_4, window_bounds = array<i64: 8, 128>}, {transform_indices = @transform_5, window_bounds = array<i64: 2, 128>}]} {
    %c0 = arith.constant 0 : index
    %c0_0 = arith.constant 0 : index
    %0 = vector.load %arg1[%c0, %c0_0] : memref<2x16xi32, #tpu.memory_space<vmem>>, vector<2x16xi32>
    %1 = tpu.iota {dimensions = array<i32: 2>} : vector<1x1x56xi32>
    %2 = vector.shape_cast %0 : vector<2x16xi32> to vector<2x16x1xi32>
    %3 = vector.broadcast %2 : vector<2x16x1xi32> to vector<2x16x56xi32>
    %4 = vector.broadcast %1 : vector<1x1x56xi32> to vector<2x16x56xi32>
    %5 = arith.cmpi eq, %3, %4 : vector<2x16x56xi32>
    %6 = arith.extui %5 : vector<2x16x56xi1> to vector<2x16x56xi32>
    %7 = arith.sitofp %6 : vector<2x16x56xi32> to vector<2x16x56xf32>
    %8 = vector.shape_cast %7 : vector<2x16x56xf32> to vector<32x56xf32>
    %c0_1 = arith.constant 0 : index
    %c0_2 = arith.constant 0 : index
    %9 = vector.load %arg2[%c0_1, %c0_2] : memref<56x32xf32, #tpu.memory_space<vmem>>, vector<56x32xf32>
    %cst = arith.constant dense<0.000000e+00> : vector<32x32xf32>
    %10 = tpu.matmul %8, %9, %cst {dimension_numbers = #tpu.dot_dimension_numbers<[1], [0], [0], [1], [0, 0, 1, 1], [], []>} : vector<32x56xf32>, vector<56x32xf32>, vector<32x32xf32> -> vector<32x32xf32>
    %c0_3 = arith.constant 0 : index
    %c0_4 = arith.constant 0 : index
    %11 = vector.load %arg3[%c0_3, %c0_4] : memref<32x128xf32, #tpu.memory_space<vmem>>, vector<32x128xf32>
    %cst_5 = arith.constant dense<0.000000e+00> : vector<32x128xf32>
    %12 = tpu.matmul %10, %11, %cst_5 {dimension_numbers = #tpu.dot_dimension_numbers<[1], [0], [0], [1], [0, 0, 1, 1], [], []>} : vector<32x32xf32>, vector<32x128xf32>, vector<32x128xf32> -> vector<32x128xf32>
    %13 = vector.shape_cast %12 : vector<32x128xf32> to vector<2x16x128xf32>
    %14 = tpu.iota {dimensions = array<i32: 2>} : vector<1x1x128xi32>
    %cst_6 = arith.constant 0.000000e+00 : f32
    %15 = vector.broadcast %cst_6 : f32 to vector<2x16x128xf32>
    %c0_i32 = arith.constant 0 : i32
    %16 = vector.broadcast %c0_i32 : i32 to vector<1x1x128xi32>
    %17 = arith.cmpi sge, %14, %16 : vector<1x1x128xi32>
    %c8_i32 = arith.constant 8 : i32
    %18 = vector.broadcast %c8_i32 : i32 to vector<1x1x128xi32>
    %19 = arith.cmpi slt, %14, %18 : vector<1x1x128xi32>
    %20 = arith.andi %17, %19 : vector<1x1x128xi1>
    %c16_i32 = arith.constant 16 : i32
    %21 = vector.broadcast %c16_i32 : i32 to vector<1x1x128xi32>
    %22 = arith.cmpi sge, %14, %21 : vector<1x1x128xi32>
    %c24_i32 = arith.constant 24 : i32
    %23 = vector.broadcast %c24_i32 : i32 to vector<1x1x128xi32>
    %24 = arith.cmpi slt, %14, %23 : vector<1x1x128xi32>
    %25 = arith.andi %22, %24 : vector<1x1x128xi1>
    %26 = arith.ori %20, %25 : vector<1x1x128xi1>
    %c40_i32 = arith.constant 40 : i32
    %27 = vector.broadcast %c40_i32 : i32 to vector<1x1x128xi32>
    %28 = arith.cmpi sge, %14, %27 : vector<1x1x128xi32>
    %c48_i32 = arith.constant 48 : i32
    %29 = vector.broadcast %c48_i32 : i32 to vector<1x1x128xi32>
    %30 = arith.cmpi slt, %14, %29 : vector<1x1x128xi32>
    %31 = arith.andi %28, %30 : vector<1x1x128xi1>
    %32 = arith.ori %26, %31 : vector<1x1x128xi1>
    %cst_7 = arith.constant 0.000000e+00 : f32
    %33 = vector.shape_cast %32 : vector<1x1x128xi1> to vector<1x1x128xi1>
    %34 = vector.broadcast %33 : vector<1x1x128xi1> to vector<2x16x128xi1>
    %35 = vector.broadcast %cst_7 : f32 to vector<2x16x128xf32>
    %36 = arith.select %34, %13, %35 : vector<2x16x128xi1>, vector<2x16x128xf32>
    %37 = arith.addf %15, %36 : vector<2x16x128xf32>
    %c15_i32 = arith.constant 15 : i32
    %38 = tpu.dynamic_rotate %13 by %c15_i32 dim 1 : vector<2x16x128xf32>, i32 -> vector<2x16x128xf32>
    %c8_i32_8 = arith.constant 8 : i32
    %39 = vector.broadcast %c8_i32_8 : i32 to vector<1x1x128xi32>
    %40 = arith.cmpi sge, %14, %39 : vector<1x1x128xi32>
    %c16_i32_9 = arith.constant 16 : i32
    %41 = vector.broadcast %c16_i32_9 : i32 to vector<1x1x128xi32>
    %42 = arith.cmpi slt, %14, %41 : vector<1x1x128xi32>
    %43 = arith.andi %40, %42 : vector<1x1x128xi1>
    %c24_i32_10 = arith.constant 24 : i32
    %44 = vector.broadcast %c24_i32_10 : i32 to vector<1x1x128xi32>
    %45 = arith.cmpi sge, %14, %44 : vector<1x1x128xi32>
    %c32_i32 = arith.constant 32 : i32
    %46 = vector.broadcast %c32_i32 : i32 to vector<1x1x128xi32>
    %47 = arith.cmpi slt, %14, %46 : vector<1x1x128xi32>
    %48 = arith.andi %45, %47 : vector<1x1x128xi1>
    %49 = arith.ori %43, %48 : vector<1x1x128xi1>
    %c48_i32_11 = arith.constant 48 : i32
    %50 = vector.broadcast %c48_i32_11 : i32 to vector<1x1x128xi32>
    %51 = arith.cmpi sge, %14, %50 : vector<1x1x128xi32>
    %c56_i32 = arith.constant 56 : i32
    %52 = vector.broadcast %c56_i32 : i32 to vector<1x1x128xi32>
    %53 = arith.cmpi slt, %14, %52 : vector<1x1x128xi32>
    %54 = arith.andi %51, %53 : vector<1x1x128xi1>
    %55 = arith.ori %49, %54 : vector<1x1x128xi1>
    %cst_12 = arith.constant 0.000000e+00 : f32
    %56 = vector.shape_cast %55 : vector<1x1x128xi1> to vector<1x1x128xi1>
    %57 = vector.broadcast %56 : vector<1x1x128xi1> to vector<2x16x128xi1>
    %58 = vector.broadcast %cst_12 : f32 to vector<2x16x128xf32>
    %59 = arith.select %57, %38, %58 : vector<2x16x128xi1>, vector<2x16x128xf32>
    %60 = arith.addf %37, %59 : vector<2x16x128xf32>
    %c14_i32 = arith.constant 14 : i32
    %61 = tpu.dynamic_rotate %13 by %c14_i32 dim 1 : vector<2x16x128xf32>, i32 -> vector<2x16x128xf32>
    %c32_i32_13 = arith.constant 32 : i32
    %62 = vector.broadcast %c32_i32_13 : i32 to vector<1x1x128xi32>
    %63 = arith.cmpi sge, %14, %62 : vector<1x1x128xi32>
    %c40_i32_14 = arith.constant 40 : i32
    %64 = vector.broadcast %c40_i32_14 : i32 to vector<1x1x128xi32>
    %65 = arith.cmpi slt, %14, %64 : vector<1x1x128xi32>
    %66 = arith.andi %63, %65 : vector<1x1x128xi1>
    %c56_i32_15 = arith.constant 56 : i32
    %67 = vector.broadcast %c56_i32_15 : i32 to vector<1x1x128xi32>
    %68 = arith.cmpi sge, %14, %67 : vector<1x1x128xi32>
    %c64_i32 = arith.constant 64 : i32
    %69 = vector.broadcast %c64_i32 : i32 to vector<1x1x128xi32>
    %70 = arith.cmpi slt, %14, %69 : vector<1x1x128xi32>
    %71 = arith.andi %68, %70 : vector<1x1x128xi1>
    %72 = arith.ori %66, %71 : vector<1x1x128xi1>
    %cst_16 = arith.constant 0.000000e+00 : f32
    %73 = vector.shape_cast %72 : vector<1x1x128xi1> to vector<1x1x128xi1>
    %74 = vector.broadcast %73 : vector<1x1x128xi1> to vector<2x16x128xi1>
    %75 = vector.broadcast %cst_16 : f32 to vector<2x16x128xf32>
    %76 = arith.select %74, %61, %75 : vector<2x16x128xi1>, vector<2x16x128xf32>
    %77 = arith.addf %60, %76 : vector<2x16x128xf32>
    %c13_i32 = arith.constant 13 : i32
    %78 = tpu.dynamic_rotate %13 by %c13_i32 dim 1 : vector<2x16x128xf32>, i32 -> vector<2x16x128xf32>
    %c64_i32_17 = arith.constant 64 : i32
    %79 = vector.broadcast %c64_i32_17 : i32 to vector<1x1x128xi32>
    %80 = arith.cmpi sge, %14, %79 : vector<1x1x128xi32>
    %c72_i32 = arith.constant 72 : i32
    %81 = vector.broadcast %c72_i32 : i32 to vector<1x1x128xi32>
    %82 = arith.cmpi slt, %14, %81 : vector<1x1x128xi32>
    %83 = arith.andi %80, %82 : vector<1x1x128xi1>
    %cst_18 = arith.constant 0.000000e+00 : f32
    %84 = vector.shape_cast %83 : vector<1x1x128xi1> to vector<1x1x128xi1>
    %85 = vector.broadcast %84 : vector<1x1x128xi1> to vector<2x16x128xi1>
    %86 = vector.broadcast %cst_18 : f32 to vector<2x16x128xf32>
    %87 = arith.select %85, %78, %86 : vector<2x16x128xi1>, vector<2x16x128xf32>
    %88 = arith.addf %77, %87 : vector<2x16x128xf32>
    %89 = tpu.iota {dimensions = array<i32: 1>} : vector<1x16x128xi32>
    %c1_i32 = arith.constant 1 : i32
    %90 = vector.broadcast %c1_i32 : i32 to vector<1x1x128xi32>
    %c0_i32_19 = arith.constant 0 : i32
    %91 = vector.broadcast %c0_i32_19 : i32 to vector<1x1x128xi32>
    %92 = arith.cmpi sge, %14, %91 : vector<1x1x128xi32>
    %c16_i32_20 = arith.constant 16 : i32
    %93 = vector.broadcast %c16_i32_20 : i32 to vector<1x1x128xi32>
    %94 = arith.cmpi slt, %14, %93 : vector<1x1x128xi32>
    %95 = arith.andi %92, %94 : vector<1x1x128xi1>
    %c2_i32 = arith.constant 2 : i32
    %96 = vector.broadcast %c2_i32 : i32 to vector<1x1x128xi32>
    %97 = arith.select %95, %96, %90 : vector<1x1x128xi1>, vector<1x1x128xi32>
    %c16_i32_21 = arith.constant 16 : i32
    %98 = vector.broadcast %c16_i32_21 : i32 to vector<1x1x128xi32>
    %99 = arith.cmpi sge, %14, %98 : vector<1x1x128xi32>
    %c40_i32_22 = arith.constant 40 : i32
    %100 = vector.broadcast %c40_i32_22 : i32 to vector<1x1x128xi32>
    %101 = arith.cmpi slt, %14, %100 : vector<1x1x128xi32>
    %102 = arith.andi %99, %101 : vector<1x1x128xi1>
    %c3_i32 = arith.constant 3 : i32
    %103 = vector.broadcast %c3_i32 : i32 to vector<1x1x128xi32>
    %104 = arith.select %102, %103, %97 : vector<1x1x128xi1>, vector<1x1x128xi32>
    %c40_i32_23 = arith.constant 40 : i32
    %105 = vector.broadcast %c40_i32_23 : i32 to vector<1x1x128xi32>
    %106 = arith.cmpi sge, %14, %105 : vector<1x1x128xi32>
    %c72_i32_24 = arith.constant 72 : i32
    %107 = vector.broadcast %c72_i32_24 : i32 to vector<1x1x128xi32>
    %108 = arith.cmpi slt, %14, %107 : vector<1x1x128xi32>
    %109 = arith.andi %106, %108 : vector<1x1x128xi1>
    %c4_i32 = arith.constant 4 : i32
    %110 = vector.broadcast %c4_i32 : i32 to vector<1x1x128xi32>
    %111 = arith.select %109, %110, %104 : vector<1x1x128xi1>, vector<1x1x128xi32>
    %c16_i32_25 = arith.constant 16 : i32
    %112 = vector.broadcast %c16_i32_25 : i32 to vector<1x1x128xi32>
    %113 = arith.subi %112, %111 : vector<1x1x128xi32>
    %114 = vector.broadcast %113 : vector<1x1x128xi32> to vector<1x16x128xi32>
    %115 = arith.cmpi sle, %89, %114 : vector<1x16x128xi32>
    %cst_26 = arith.constant 0xFF800000 : f32
    %116 = vector.shape_cast %115 : vector<1x16x128xi1> to vector<1x16x128xi1>
    %117 = vector.broadcast %116 : vector<1x16x128xi1> to vector<2x16x128xi1>
    %118 = vector.broadcast %cst_26 : f32 to vector<2x16x128xf32>
    %119 = arith.select %117, %88, %118 : vector<2x16x128xi1>, vector<2x16x128xf32>
    %c0_i32_27 = arith.constant 0 : i32
    %120 = vector.broadcast %c0_i32_27 : i32 to vector<1x1x128xi32>
    %121 = arith.cmpi sge, %14, %120 : vector<1x1x128xi32>
    %c8_i32_28 = arith.constant 8 : i32
    %122 = vector.broadcast %c8_i32_28 : i32 to vector<1x1x128xi32>
    %123 = arith.cmpi slt, %14, %122 : vector<1x1x128xi32>
    %124 = arith.andi %121, %123 : vector<1x1x128xi1>
    %c16_i32_29 = arith.constant 16 : i32
    %125 = vector.broadcast %c16_i32_29 : i32 to vector<1x1x128xi32>
    %126 = arith.cmpi sge, %14, %125 : vector<1x1x128xi32>
    %c24_i32_30 = arith.constant 24 : i32
    %127 = vector.broadcast %c24_i32_30 : i32 to vector<1x1x128xi32>
    %128 = arith.cmpi slt, %14, %127 : vector<1x1x128xi32>
    %129 = arith.andi %126, %128 : vector<1x1x128xi1>
    %130 = arith.ori %124, %129 : vector<1x1x128xi1>
    %c40_i32_31 = arith.constant 40 : i32
    %131 = vector.broadcast %c40_i32_31 : i32 to vector<1x1x128xi32>
    %132 = arith.cmpi sge, %14, %131 : vector<1x1x128xi32>
    %c48_i32_32 = arith.constant 48 : i32
    %133 = vector.broadcast %c48_i32_32 : i32 to vector<1x1x128xi32>
    %134 = arith.cmpi slt, %14, %133 : vector<1x1x128xi32>
    %135 = arith.andi %132, %134 : vector<1x1x128xi1>
    %136 = arith.ori %130, %135 : vector<1x1x128xi1>
    %c120_i32 = arith.constant 120 : i32
    %137 = tpu.dynamic_rotate %119 by %c120_i32 dim 2 : vector<2x16x128xf32>, i32 -> vector<2x16x128xf32>
    %cst_33 = arith.constant 0.000000e+00 : f32
    %138 = vector.shape_cast %136 : vector<1x1x128xi1> to vector<1x1x128xi1>
    %139 = vector.broadcast %138 : vector<1x1x128xi1> to vector<2x16x128xi1>
    %140 = vector.broadcast %cst_33 : f32 to vector<2x16x128xf32>
    %141 = arith.select %139, %137, %140 : vector<2x16x128xi1>, vector<2x16x128xf32>
    %142 = arith.addf %119, %141 : vector<2x16x128xf32>
    %c16_i32_34 = arith.constant 16 : i32
    %143 = vector.broadcast %c16_i32_34 : i32 to vector<1x1x128xi32>
    %144 = arith.cmpi sge, %14, %143 : vector<1x1x128xi32>
    %c24_i32_35 = arith.constant 24 : i32
    %145 = vector.broadcast %c24_i32_35 : i32 to vector<1x1x128xi32>
    %146 = arith.cmpi slt, %14, %145 : vector<1x1x128xi32>
    %147 = arith.andi %144, %146 : vector<1x1x128xi1>
    %c40_i32_36 = arith.constant 40 : i32
    %148 = vector.broadcast %c40_i32_36 : i32 to vector<1x1x128xi32>
    %149 = arith.cmpi sge, %14, %148 : vector<1x1x128xi32>
    %c48_i32_37 = arith.constant 48 : i32
    %150 = vector.broadcast %c48_i32_37 : i32 to vector<1x1x128xi32>
    %151 = arith.cmpi slt, %14, %150 : vector<1x1x128xi32>
    %152 = arith.andi %149, %151 : vector<1x1x128xi1>
    %153 = arith.ori %147, %152 : vector<1x1x128xi1>
    %c112_i32 = arith.constant 112 : i32
    %154 = tpu.dynamic_rotate %119 by %c112_i32 dim 2 : vector<2x16x128xf32>, i32 -> vector<2x16x128xf32>
    %cst_38 = arith.constant 0.000000e+00 : f32
    %155 = vector.shape_cast %153 : vector<1x1x128xi1> to vector<1x1x128xi1>
    %156 = vector.broadcast %155 : vector<1x1x128xi1> to vector<2x16x128xi1>
    %157 = vector.broadcast %cst_38 : f32 to vector<2x16x128xf32>
    %158 = arith.select %156, %154, %157 : vector<2x16x128xi1>, vector<2x16x128xf32>
    %159 = arith.addf %142, %158 : vector<2x16x128xf32>
    %c40_i32_39 = arith.constant 40 : i32
    %160 = vector.broadcast %c40_i32_39 : i32 to vector<1x1x128xi32>
    %161 = arith.cmpi sge, %14, %160 : vector<1x1x128xi32>
    %c48_i32_40 = arith.constant 48 : i32
    %162 = vector.broadcast %c48_i32_40 : i32 to vector<1x1x128xi32>
    %163 = arith.cmpi slt, %14, %162 : vector<1x1x128xi32>
    %164 = arith.andi %161, %163 : vector<1x1x128xi1>
    %c104_i32 = arith.constant 104 : i32
    %165 = tpu.dynamic_rotate %119 by %c104_i32 dim 2 : vector<2x16x128xf32>, i32 -> vector<2x16x128xf32>
    %cst_41 = arith.constant 0.000000e+00 : f32
    %166 = vector.shape_cast %164 : vector<1x1x128xi1> to vector<1x1x128xi1>
    %167 = vector.broadcast %166 : vector<1x1x128xi1> to vector<2x16x128xi1>
    %168 = vector.broadcast %cst_41 : f32 to vector<2x16x128xf32>
    %169 = arith.select %167, %165, %168 : vector<2x16x128xi1>, vector<2x16x128xf32>
    %170 = arith.addf %159, %169 : vector<2x16x128xf32>
    %cst_42 = arith.constant dense<0xFF800000> : vector<2x128xf32>
    %171 = vector.multi_reduction <maximumf>, %170, %cst_42 [1] : vector<2x16x128xf32> to vector<2x128xf32>
    %c0_43 = arith.constant 0 : index
    %c0_44 = arith.constant 0 : index
    %172 = vector.load %arg5[%c0_43, %c0_44] : memref<8x128xf32, #tpu.memory_space<vmem>>, vector<1x128xf32>
    %173 = vector.broadcast %172 : vector<1x128xf32> to vector<2x128xf32>
    %174 = arith.addf %171, %173 : vector<2x128xf32>
    %cst_45 = arith.constant 0.000000e+00 : f32
    %175 = vector.broadcast %cst_45 : f32 to vector<2x128xf32>
    %176 = arith.maximumf %174, %175 : vector<2x128xf32>
    %c0_46 = arith.constant 0 : index
    %c0_47 = arith.constant 0 : index
    %177 = vector.load %arg4[%c0_46, %c0_47] : memref<128x128xf32, #tpu.memory_space<vmem>>, vector<128x128xf32>
    %cst_48 = arith.constant dense<0.000000e+00> : vector<2x128xf32>
    %178 = tpu.matmul %176, %177, %cst_48 {dimension_numbers = #tpu.dot_dimension_numbers<[1], [0], [0], [1], [0, 0, 1, 1], [], []>} : vector<2x128xf32>, vector<128x128xf32>, vector<2x128xf32> -> vector<2x128xf32>
    %c1 = arith.constant 1 : index
    %c0_49 = arith.constant 0 : index
    %179 = vector.load %arg5[%c1, %c0_49] : memref<8x128xf32, #tpu.memory_space<vmem>>, vector<1x128xf32>
    %180 = vector.broadcast %179 : vector<1x128xf32> to vector<2x128xf32>
    %181 = arith.addf %178, %180 : vector<2x128xf32>
    %c0_50 = arith.constant 0 : index
    %c0_51 = arith.constant 0 : index
    %182 = vector.load %arg6[%c0_50, %c0_51] : memref<2x128xf32, #tpu.memory_space<vmem>>, vector<2x128xf32>
    tpu.vector_store %arg6[%c0_50, %c0_51], %181 {strides = array<i32>} : memref<2x128xf32, #tpu.memory_space<vmem>>, vector<2x128xf32>,
    return
  }
  func.func @transform_0(%arg0: i32) -> (i32, i32) {
    %c0_i32 = arith.constant 0 : i32
    %c0_i32_0 = arith.constant 0 : i32
    return %arg0, %c0_i32 : i32, i32
  }
  func.func @transform_1(%arg0: i32) -> (i32, i32) {
    %c0_i32 = arith.constant 0 : i32
    %c0_i32_0 = arith.constant 0 : i32
    %c0_i32_1 = arith.constant 0 : i32
    return %c0_i32, %c0_i32_0 : i32, i32
  }
  func.func @transform_2(%arg0: i32) -> (i32, i32) {
    %c0_i32 = arith.constant 0 : i32
    %c0_i32_0 = arith.constant 0 : i32
    %c0_i32_1 = arith.constant 0 : i32
    return %c0_i32, %c0_i32_0 : i32, i32
  }
  func.func @transform_3(%arg0: i32) -> (i32, i32) {
    %c0_i32 = arith.constant 0 : i32
    %c0_i32_0 = arith.constant 0 : i32
    %c0_i32_1 = arith.constant 0 : i32
    return %c0_i32, %c0_i32_0 : i32, i32
  }
  func.func @transform_4(%arg0: i32) -> (i32, i32) {
    %c0_i32 = arith.constant 0 : i32
    %c0_i32_0 = arith.constant 0 : i32
    %c0_i32_1 = arith.constant 0 : i32
    return %c0_i32, %c0_i32_0 : i32, i32
  }
  func.func @transform_5(%arg0: i32) -> (i32, i32) {
    %c0_i32 = arith.constant 0 : i32
    %c0_i32_0 = arith.constant 0 : i32
    return %arg0, %c0_i32 : i32, i32
  }
}

</mosaic_0001>

<bundles_post_ra>
// kernel: tpu_custom_call.1
= control target key start
LH: loop header
LB: loop body
LE: loop exit
PB: predicated region body
PF: predicated region fallthrough
CT: control target
= control target key end

     0   :  { %10 = vsyncpa [#allocation3], 0  ;;  %s1134_s0 = inlined_call_operand.vmem [shape: s32[2,16], index: 0, kind: input, shape index: {}]   ;;  %s1135_s1 = inlined_call_operand.vmem [shape: f32[56,32], index: 1, kind: input, shape index: {}]   ;;  %s1136_s2 = inlined_call_operand.vmem [shape: f32[32,128], index: 2, kind: input, shape index: {}]   ;;  %s1137_s3 = inlined_call_operand.hbm [shape: f32[128,128], index: 3, kind: input, shape index: {}]   ;;  %s1138_s4 = inlined_call_operand.vmem [shape: f32[8,128], index: 4, kind: input, shape index: {}]   ;;  %s1139_s5 = inlined_call_operand.hbm [shape: f32[2,128], index: 5, kind: output, shape index: {}]  }
   0x1   :  { %11 = vsyncpa [#allocation4], 0  ;;  %s809_s18 = smov [#allocation2]   ;;  %s761_s22 = scalar_lea.hbm %s1137_s3, 2048 }
   0x2   :  { %s23_s19 = sshll.u32 %s809_s18, 4  ;;  %p762_p0 = scmp.ne.s32.totalorder %s1137_s3, %s761_s22  ;;  %s24_s19 = int_to_ptr.vmem [resolvable:$true] %s23_s19 }
   0x3   :  { %p765_p1 = scmp.lt.u32.totalorder %s761_s22, %s1137_s3 }
   0x5   :  { %p767_p2 = pnand %p765_p1, %p762_p0 }
   0x7   :  { %770 = shalt.err (!%p767_p2)
}
   0x8   :  { %s771_s27 = scalar_lea.vmem %s24_s19, 2048  ;;  %p776_p4 = scmp.lt.s32.totalorder %s24_s19, %s24_s19 }
   0x9   :  { %p772_p3 = scmp.ne.s32.totalorder %s24_s19, %s771_s27  ;;  %p777_p5 = scmp.lt.s32.totalorder %s771_s27, %s771_s27 }
   0xb   :  { %p778_p6 = por %p777_p5, %p776_p4 }
   0xd   :  { %p779_p7 = pnand %p778_p6, %p772_p3 }
   0xf   :  { %782 = shalt.err (!%p779_p7)
}
  0x10   :  { %s810_s28 = smov 128   ;;  %s811_s29 = smov 8  }
  0x11   :  { %29 = dma.hbm_to_vmem [thread:$0]  %s1137_s3, 2048, %s24_s19, [#allocation3], %s810_s28, %s810_s28, %s811_s29  }
  0x12   :  { %805 = dma.done.wait [#allocation3], 2048  }
  0x13   :  { %806 = vsyncadd [#allocation3], 4294965248  ;;  %v36_v0 = vlaneseq  ;;  %v35_v4 = vld [vmem:[%s1134_s0] sm:$0x3]  ;;  %v73_v6 = vld [vmem:[%s1135_s1 + $0x8] sm:$0xff]  ;;  %vm79_vm0 = vcmask 457728  }
  0x14   :  { %v72_v5 = vld [vmem:[%s1135_s1] sm:$0xff]  ;;  %v74_v10 = vld [vmem:[%s1135_s1 + $0x10] sm:$0xff]  ;;  %v75_v11 = vld [vmem:[%s1135_s1 + $0x18] sm:$0xff]  ;;  %v812_v23 = vmov 0.0   ;;  %vm181_vm5 = vcmask 261120   ;;  %v813_v38 = vmov 1  }
  0x15   :  { %v862_v1 = vshrl.u32 %v36_v0, 7  ;;  %v706_v9 = vpack.c.bf16 %v73_v6, %v72_v5  ;;  %v710_v12 = vpack.c.bf16 %v75_v11, %v74_v10  ;;  %v76_v13 = vld [vmem:[%s1135_s1 + $0x20] sm:$0xff]  ;;  %v77_v14 = vld [vmem:[%s1135_s1 + $0x28] sm:$0xff]  ;;  %v78_v16 = vld [vmem:[%s1135_s1 + $0x30] sm:$0xff]  ;;  %v896_v20 = vand.u32 127, %v36_v0  ;;  %s816_s28 = smov 112  }
  0x16   :  { %v714_v15 = vpack.c.bf16 %v77_v14, %v76_v13  ;;  %v177_v17 = vld [vmem:[%s1136_s2] sm:$0xff]  ;;  %v178_v18 = vld [vmem:[%s1136_s2 + $0x8] sm:$0xff]  ;;  %v179_v25 = vld [vmem:[%s1136_s2 + $0x10] sm:$0xff]  ;;  %s817_s29 = smov 104   ;;  %s819_s9 = smov [#allocation5]  }
  0x17   :  { %v40_v2 = vsub.s32 0, %v862_v1  ;;  %v51_v3 = vsub.s32 1, %v862_v1  ;;  %707 = vmatprep.subr.bf16.mxu0 %v706_v9  ;;  %v718_v19 = vpack.c.bf16 %v178_v18, %v177_v17  ;;  %v180_v26 = vld [vmem:[%s1136_s2 + $0x18] sm:$0xff]  ;;  %vm282_vm6 = vcmp.ge.s32.totalorder %v896_v20, 16  ;;  %s815_s2 = smov 120   ;;  %v482_v60 = vld [vmem:[#allocation2 + $0x40] sm:$0xff] }
  0x18   :  { %709 = vmatpush3.bf16.msra.mxu0 %v706_v9  ;;  %v722_v30 = vpack.c.bf16 %v180_v26, %v179_v25  ;;  %vm283_vm7 = vcmp.lt.s32.totalorder %v896_v20, 24  ;;  %vm280_vm8 = vcmp.lt.s32.totalorder %v896_v20, 8  ;;  %vm286_vm10 = vcmp.ge.s32.totalorder %v896_v20, 40  ;;  %v486_v10 = vld [vmem:[#allocation2 + $0x60] sm:$0xff]  ;;  %s578_s10 = sshll.u32 %s819_s9, 4  ;;  %s579_s10 = int_to_ptr.vmem [resolvable:$true] %s578_s10 }
  0x19   :  { %v41_v7 = vrot.slane %v35_v4, %v40_v2  ;;  %v52_v8 = vrot.slane %v35_v4, %v51_v3  ;;  %711 = vmatprep.subr.bf16.mxu0 %v710_v12  ;;  %vm919_vm9 = vmand %vm282_vm6, %vm283_vm7  ;;  %vm287_vm11 = vcmp.lt.s32.totalorder %v896_v20, 48  ;;  %vm312_vm12 = vcmp.lt.s32.totalorder %v896_v20, 16  ;;  %s783_s11 = scalar_lea.vmem %s579_s10, 32  ;;  %p788_p9 = scmp.lt.s32.totalorder %s579_s10, %s579_s10 }
  0x1a   :  { %vm1140_vm13 = vcmp.lt.s32.totalorder %v896_v20, 40  ;;  %v382_v39 = vsel %vm312_vm12, 2, %v813_v38  ;;  %vm285_vm15 = vmor %vm280_vm8, %vm919_vm9  ;;  %vm318_vm8 = vcmp.ge.s32.totalorder %v896_v20, 48  ;;  %v380_v46 = vadd.s32 8, %v862_v1  ;;  %p784_p8 = scmp.ne.s32.totalorder %s579_s10, %s783_s11  ;;  %p789_p10 = scmp.lt.s32.totalorder %s783_s11, %s783_s11 }
  0x1b   :  { %43 = vbcast.lane.b32.xlu0 %v41_v7, 256  ;;  %54 = vbcast.lane.b32.xlu1 %v52_v8, 256  ;;  %vm383_vm14 = vmand %vm282_vm6, %vm1140_vm13 }
  0x1c   :  { %713 = vmatpush3.bf16.msra.mxu0 %v710_v12  ;;  %v384_v41 = vsel %vm383_vm14, 3, %v382_v39  ;;  %vm344_vm14 = vcmp.ge.s32.totalorder %v896_v20, 56  ;;  %p790_p11 = por %p789_p10, %p788_p9 }
  0x1d   :  { %715 = vmatprep.subr.bf16.mxu0 %v714_v15 }
  0x1e   :  { %p791_p12 = pnand %p790_p11, %p784_p8 }
  0x1f   :  { %47 = vbcast.lane.b32.xlu0 %v41_v7, 264  ;;  %58 = vbcast.lane.b32.xlu1 %v52_v8, 264 }
  0x20   :  { %717 = vmatpush3.bf16.msra.mxu0 %v714_v15 }
  0x21   :  { %649 = vmatprep.subr.mxu0 %v78_v16 }
  0x24   :  { %650 = vmatpush3.msra.mxu0 %v78_v16 }
  0x25   :  { %719 = vmatprep.subr.bf16.mxu0 %v718_v19 }
  0x8d   :  { %v44_v21 = vpop.permute.xlu0 %43  ;;  %v55_v22 = vpop.permute.xlu1 %54 }
  0x8e   :  { %vm60_vm1 = vcmp.eq.s32.totalorder %v44_v21, %v896_v20  ;;  %vm62_vm2 = vcmp.eq.s32.totalorder %v55_v22, %v896_v20 }
  0x8f   :  { %v587_v24 = vsel %vm60_vm1, 1.0, %v812_v23  ;;  %v589_v29 = vsel %vm62_vm2, 1.0, %v812_v23  ;;  %vm932_vm1 = vmand %vm286_vm10, %vm287_vm11  ;;  %vm314_vm2 = vcmp.ge.s32.totalorder %v896_v20, 24  ;;  %vm319_vm11 = vcmp.lt.s32.totalorder %v896_v20, 56 }
  0x90   :  { %651 = vmatprep.mubr.msk.f32.mxu0 %vm79_vm0, %v587_v24  ;;  %vm953_vm13 = vmor %vm285_vm15, %vm932_vm1  ;;  %vm306_vm15 = vcmp.lt.s32.totalorder %v862_v1, 7 }
  0x91   :  { %v48_v27 = vpop.permute.xlu0 %47  ;;  %v59_v28 = vpop.permute.xlu1 %58 }
  0x92   :  { %vm61_vm3 = vcmp.eq.s32.totalorder %v48_v27, %v896_v20  ;;  %vm63_vm4 = vcmp.eq.s32.totalorder %v59_v28, %v896_v20 }
  0x93   :  { %v588_v31 = vsel %vm61_vm3, 1.0, %v812_v23  ;;  %v590_v32 = vsel %vm63_vm4, 1.0, %v812_v23  ;;  %vm315_vm3 = vcmp.lt.s32.totalorder %v896_v20, 32  ;;  %vm1141_vm4 = vcmp.lt.s32.totalorder %v896_v20, 72 }
  0x94   :  { %652 = vmatmul.mubr.msk.f32.vlgmr.msra.gmra.mrb[0].mxu0 %vm79_vm0, %v588_v31  ;;  %vm945_vm7 = vmand %vm314_vm2, %vm315_vm3 }
  0x95   :  { %654 = vmatprep.mubr.msk.f32.mxu0 %vm79_vm0, %v589_v29  ;;  %721 = vmatpush3.bf16.msra.mxu0 %v718_v19  ;;  %vm320_vm2 = vmand %vm318_vm8, %vm319_vm11  ;;  %vm362_vm8 = vcmp.lt.s32.totalorder %v862_v1, 5 }
  0x96   :  { %723 = vmatprep.subr.bf16.mxu0 %v722_v30 }
  0x98   :  { %655 = vmatmul.mubr.msk.f32.gmra.mrb[2].mxu0 %vm79_vm0, %v590_v32  ;;  %vm311_vm0 = vcmp.ge.s32.totalorder %v896_v20, 8 }
  0x99   :  { %725 = vmatpush3.bf16.msra.mxu0 %v722_v30  ;;  %vm941_vm6 = vmand %vm311_vm0, %vm312_vm12  ;;  %vm345_vm0 = vcmp.lt.s32.totalorder %v896_v20, 64 }
  0x9a   :  { %vm346_vm12 = vmand %vm344_vm14, %vm345_vm0 }
  0x9b   :  { %vm1155_vm11 = vmor %vm941_vm6, %vm945_vm7  ;;  %vm1162_vm7 = vcmp.lt.s32.totalorder %v862_v1, 6 }
  0x9c   :  { %vm979_vm3 = vmor %vm1155_vm11, %vm320_vm2 }
  0x9d   :  { %vm1168_vm2 = vmmov %vm1162_vm7 }
 0x167   :  { %v653_v33 = vpop.f32.mrb[0].mxu0 }
 0x168   :  { %v158_v34 = vpop.f32.mrb[1].mxu0 }
 0x169   :  { %665 = vmatprep.mubr.msk.f32.mxu0 %vm181_vm5, %v158_v34 }
 0x16a   :  { %666 = vmatmul.mubr.msk.f32.vlgmr.msra.gmra.mrb[4].mxu0 %vm181_vm5, %v653_v33 }
 0x16b   :  { %v656_v35 = vpop.f32.mrb[2].mxu0 }
 0x16c   :  { %v168_v36 = vpop.f32.mrb[3].mxu0 }
 0x16d   :  { %668 = vmatprep.mubr.msk.f32.mxu0 %vm181_vm5, %v168_v36 }
 0x16e   :  { %669 = vmatmul.mubr.msk.f32.gmra.mrb[6].mxu0 %vm181_vm5, %v656_v35  ;;  %vm385_vm5 = vmand %vm286_vm10, %vm1141_vm4  ;;  %vm341_vm10 = vcmp.ge.s32.totalorder %v896_v20, 32 }
 0x16f   :  { %v386_v44 = vsel %vm385_vm5, 4, %v384_v41  ;;  %vm1152_vm5 = vcmp.lt.s32.totalorder %v896_v20, 40 }
 0x170   :  { %v387_v47 = vsub.s32 16, %v386_v44  ;;  %vm969_vm4 = vmand %vm341_vm10, %vm1152_vm5  ;;  %vm367_vm10 = vcmp.ge.s32.totalorder %v896_v20, 64 }
 0x171   :  { %vm998_vm6 = vmor %vm969_vm4, %vm346_vm12  ;;  %vm1163_vm4 = vcmp.lt.s32.totalorder %v896_v20, 72 }
 0x172   :  { %vm988_vm14 = vcmp.le.s32.totalorder %v380_v46, %v387_v47  ;;  %vm1014_vm12 = vmand %vm367_vm10, %vm1163_vm4  ;;  %vm1019_vm0 = vcmp.le.s32.totalorder %v862_v1, %v387_v47  ;;  %v474_v46 = vld [vmem:[#allocation2] sm:$0xff]  ;;  %v475_v47 = vld [vmem:[#allocation2 + $0x8] sm:$0xff] }
 0x173   :  { %vm1169_vm5 = vmmov %vm1168_vm2 }
 0x23d   :  { %v667_v48 = vpop.f32.mrb[4].mxu0 }
 0x23e   :  { %v302_v50 = vrot.slane %v667_v48, 1  ;;  %v334_v51 = vrot.slane %v667_v48, 2  ;;  %v360_v52 = vrot.slane %v667_v48, 3  ;;  %v260_v53 = vpop.f32.mrb[5].mxu0  ;;  %v293_v58 = vsel %vm953_vm13, %v667_v48, 0.0 }
 0x23f   :  { %v300_v54 = vrot.slane %v260_v53, 1  ;;  %v332_v56 = vrot.slane %v260_v53, 2  ;;  %v358_v57 = vrot.slane %v260_v53, 3  ;;  %v292_v59 = vsel %vm953_vm13, %v260_v53, 0.0 }
 0x241   :  { %v307_v61 = vsel %vm306_vm15, %v300_v54, %v302_v50  ;;  %v309_v62 = vsel %vm306_vm15, %v302_v50, %v300_v54  ;;  %v670_v63 = vpop.f32.mrb[6].mxu0  ;;  %v339_v2 = vsel %vm1162_vm7, %v334_v51, %v332_v56  ;;  %v365_v3 = vsel %vm362_vm8, %v360_v52, %v358_v57 }
 0x242   :  { %v324_v4 = vsel %vm979_vm3, %v307_v61, 0.0  ;;  %v295_v5 = vsel %vm953_vm13, %v670_v63, 0.0  ;;  %v303_v6 = vrot.slane %v670_v63, 1  ;;  %v335_v7 = vrot.slane %v670_v63, 2  ;;  %v270_v8 = vpop.f32.mrb[7].mxu0  ;;  %v478_v61 = vld [vmem:[#allocation2 + $0x20] sm:$0xff] }
 0x243   :  { %v328_v11 = vadd.f32 %v324_v4, %v292_v59  ;;  %v361_v12 = vrot.slane %v670_v63, 3  ;;  %v294_v13 = vsel %vm953_vm13, %v270_v8, 0.0  ;;  %v301_v14 = vrot.slane %v270_v8, 1 }
 0x244   :  { %v333_v15 = vrot.slane %v270_v8, 2  ;;  %v359_v16 = vrot.slane %v270_v8, 3  ;;  %v325_v17 = vsel %vm979_vm3, %v309_v62, 0.0  ;;  %v351_v18 = vsel %vm998_vm6, %v339_v2, 0.0  ;;  %v479_v62 = vld [vmem:[#allocation2 + $0x28] sm:$0xff]  ;;  %v480_v2 = vld [vmem:[#allocation2 + $0x30] sm:$0xff] }
 0x245   :  { %v308_v19 = vsel %vm306_vm15, %v301_v14, %v303_v6  ;;  %v310_v20 = vsel %vm306_vm15, %v303_v6, %v301_v14  ;;  %v329_v21 = vadd.f32 %v325_v17, %v293_v58  ;;  %v373_v22 = vsel %vm1014_vm12, %v365_v3, 0.0  ;;  %vm1170_vm15 = vmmov %vm1168_vm2  ;;  %v481_v3 = vld [vmem:[#allocation2 + $0x38] sm:$0xff] }
 0x246   :  { %v326_v24 = vsel %vm979_vm3, %v308_v19, 0.0  ;;  %v327_v25 = vsel %vm979_vm3, %v310_v20, 0.0  ;;  %v338_v26 = vsel %vm1168_vm2, %v333_v15, %v335_v7  ;;  %v340_v27 = vsel %vm1169_vm5, %v335_v7, %v333_v15  ;;  %v484_v7 = vld [vmem:[#allocation2 + $0x50] sm:$0xff]  ;;  %v485_v8 = vld [vmem:[#allocation2 + $0x58] sm:$0xff] }
 0x247   :  { %v330_v28 = vadd.f32 %v326_v24, %v294_v13  ;;  %v352_v29 = vsel %vm998_vm6, %v338_v26, 0.0  ;;  %v355_v30 = vadd.f32 %v351_v18, %v329_v21  ;;  %v337_v31 = vsel %vm1170_vm15, %v332_v56, %v334_v51  ;;  %v476_v56 = vld [vmem:[#allocation2 + $0x10] sm:$0xff]  ;;  %v489_v14 = vld [vmem:[#allocation2 + $0x78] sm:$0xff] }
 0x248   :  { %v350_v32 = vsel %vm998_vm6, %v337_v31, 0.0  ;;  %v363_v33 = vsel %vm362_vm8, %v358_v57, %v360_v52  ;;  %v331_v34 = vadd.f32 %v327_v25, %v295_v5  ;;  %v353_v35 = vsel %vm998_vm6, %v340_v27, 0.0  ;;  %v477_v57 = vld [vmem:[#allocation2 + $0x18] sm:$0xff]  ;;  %v483_v5 = vld [vmem:[#allocation2 + $0x48] sm:$0xff]  ;;  %v488_v13 = vld [vmem:[#allocation2 + $0x70] sm:$0xff] }
 0x249   :  { %v356_v36 = vadd.f32 %v352_v29, %v330_v28  ;;  %v377_v38 = vadd.f32 %v373_v22, %v355_v30  ;;  %v354_v39 = vadd.f32 %v350_v32, %v328_v11  ;;  %v372_v41 = vsel %vm1014_vm12, %v363_v33, 0.0  ;;  %v487_v11 = vld [vmem:[#allocation2 + $0x68] sm:$0xff] }
 0x24a   :  { %v357_v42 = vadd.f32 %v353_v35, %v331_v34  ;;  %v366_v43 = vsel %vm362_vm8, %v361_v12, %v359_v16  ;;  %v364_v44 = vsel %vm362_vm8, %v359_v16, %v361_v12  ;;  %v814_v52 = vmov 0.0|0.0   ;;  %vm1088_vm8 = vmor %vm919_vm9, %vm932_vm1 }
 0x24b   :  { %v1061_v48 = vsel %vm988_vm14, %v377_v38, -inf  ;;  %v376_v49 = vadd.f32 %v372_v41, %v354_v39  ;;  %v375_v50 = vsel %vm1014_vm12, %v366_v43, 0.0  ;;  %v374_v51 = vsel %vm1014_vm12, %v364_v44, 0.0  ;;  %726 = vmatprep.subr.bf16.mxu1 %v814_v52 }
 0x24c   :  { %400 = vrot.lane.b32.xlu1 %v1061_v48, %s815_s2  ;;  %v379_v1 = vadd.f32 %v375_v50, %v357_v42  ;;  %v378_v53 = vadd.f32 %v374_v51, %v356_v36  ;;  %v727_v54 = vpack.c.bf16 %v475_v47, %v474_v46  ;;  %v730_v58 = vpack.c.bf16 %v477_v57, %v476_v56 }
 0x24d   :  { %v1070_v55 = vsel %vm1019_vm0, %v376_v49, -inf  ;;  %v733_v0 = vpack.c.bf16 %v479_v62, %v478_v61  ;;  %v736_v4 = vpack.c.bf16 %v481_v3, %v480_v2  ;;  %v739_v6 = vpack.c.bf16 %v483_v5, %v482_v60 }
 0x24e   :  { %398 = vrot.lane.b32.xlu0 %v1070_v55, %s815_s2  ;;  %728 = vmatpush3.bf16.msra.mxu1 %v727_v54  ;;  %v397_v59 = vsel %vm988_vm14, %v379_v1, -inf  ;;  %v396_v63 = vsel %vm1019_vm0, %v378_v53, -inf  ;;  %v742_v9 = vpack.c.bf16 %v485_v8, %v484_v7  ;;  %v745_v12 = vpack.c.bf16 %v487_v11, %v486_v10  ;;  %v600_v10 = vld [vmem:[%s1138_s4 + $0x1] ss:$0 sm:$0xff] }
 0x24f   :  { %729 = vmatprep.subr.bf16.mxu1 %v814_v52  ;;  %vm818_vm3 = vmmov 0   ;;  %v748_v15 = vpack.c.bf16 %v489_v14, %v488_v13  ;;  %vm498_vm9 = vcmask 1041409  }
 0x250   :  { %417 = vrot.lane.b32.xlu1 %v1061_v48, %s816_s28  ;;  %703 = vmatprep.mubr.msk.f32.mxu1 %vm818_vm3, %v812_v23 }
 0x252   :  { %415 = vrot.lane.b32.xlu0 %v1070_v55, %s816_s28  ;;  %731 = vmatpush3.bf16.msra.mxu1 %v730_v58 }
 0x253   :  { %732 = vmatprep.subr.bf16.mxu1 %v814_v52 }
 0x254   :  { %404 = vrot.lane.b32.xlu1 %v397_v59, %s815_s2 }
 0x256   :  { %402 = vrot.lane.b32.xlu0 %v396_v63, %s815_s2  ;;  %734 = vmatpush3.bf16.msra.mxu1 %v733_v0  ;;  %v599_v0 = vld [vmem:[%s1138_s4] ss:$0 sm:$0xff] }
 0x257   :  { %735 = vmatprep.subr.bf16.mxu1 %v814_v52 }
 0x258   :  { %421 = vrot.lane.b32.xlu1 %v397_v59, %s816_s28 }
 0x25a   :  { %419 = vrot.lane.b32.xlu0 %v396_v63, %s816_s28  ;;  %737 = vmatpush3.bf16.msra.mxu1 %v736_v4 }
 0x25b   :  { %738 = vmatprep.subr.bf16.mxu1 %v814_v52 }
 0x25c   :  { %439 = vrot.lane.b32.xlu1 %v397_v59, %s817_s29 }
 0x25e   :  { %437 = vrot.lane.b32.xlu0 %v396_v63, %s817_s29  ;;  %740 = vmatpush3.bf16.msra.mxu1 %v739_v6 }
 0x25f   :  { %741 = vmatprep.subr.bf16.mxu1 %v814_v52 }
 0x260   :  { %435 = vrot.lane.b32.xlu1 %v1061_v48, %s817_s29 }
 0x262   :  { %433 = vrot.lane.b32.xlu0 %v1070_v55, %s817_s29  ;;  %743 = vmatpush3.bf16.msra.mxu1 %v742_v9 }
 0x263   :  { %744 = vmatprep.subr.bf16.mxu1 %v814_v52 }
 0x266   :  { %746 = vmatpush3.bf16.msra.mxu1 %v745_v12 }
 0x267   :  { %747 = vmatprep.subr.bf16.mxu1 %v814_v52 }
 0x26a   :  { %749 = vmatpush3.bf16.msra.mxu1 %v748_v15 }
 0x2be   :  { %v401_v16 = vpop.permute.xlu1 %400 }
 0x2bf   :  { %v407_v29 = vsel %vm953_vm13, %v401_v16, 0.0 }
 0x2c0   :  { %v399_v17 = vpop.permute.xlu0 %398  ;;  %v411_v36 = vadd.f32 %v407_v29, %v1061_v48 }
 0x2c1   :  { %v406_v33 = vsel %vm953_vm13, %v399_v17, 0.0 }
 0x2c2   :  { %v418_v18 = vpop.permute.xlu1 %417  ;;  %v410_v45 = vadd.f32 %v406_v33, %v1070_v55 }
 0x2c3   :  { %v426_v34 = vsel %vm1088_vm8, %v418_v18, 0.0 }
 0x2c4   :  { %v416_v19 = vpop.permute.xlu0 %415  ;;  %v430_v44 = vadd.f32 %v426_v34, %v411_v36 }
 0x2c5   :  { %v425_v42 = vsel %vm1088_vm8, %v416_v19, 0.0 }
 0x2c6   :  { %v405_v20 = vpop.permute.xlu1 %404  ;;  %v429_v50 = vadd.f32 %v425_v42, %v410_v45 }
 0x2c7   :  { %v409_v22 = vsel %vm953_vm13, %v405_v20, 0.0 }
 0x2c8   :  { %v403_v21 = vpop.permute.xlu0 %402  ;;  %v413_v27 = vadd.f32 %v409_v22, %v397_v59 }
 0x2c9   :  { %v408_v25 = vsel %vm953_vm13, %v403_v21, 0.0 }
 0x2ca   :  { %v422_v24 = vpop.permute.xlu1 %421  ;;  %v412_v37 = vadd.f32 %v408_v25, %v396_v63 }
 0x2cb   :  { %v428_v26 = vsel %vm1088_vm8, %v422_v24, 0.0 }
 0x2cc   :  { %v420_v28 = vpop.permute.xlu0 %419  ;;  %v432_v31 = vadd.f32 %v428_v26, %v413_v27 }
 0x2cd   :  { %v427_v30 = vsel %vm1088_vm8, %v420_v28, 0.0 }
 0x2ce   :  { %v440_v32 = vpop.permute.xlu1 %439  ;;  %v431_v38 = vadd.f32 %v427_v30, %v412_v37 }
 0x2cf   :  { %v446_v35 = vsel %vm932_vm1, %v440_v32, 0.0 }
 0x2d0   :  { %v450_v39 = vadd.f32 %v446_v35, %v432_v31  ;;  %v438_v41 = vpop.permute.xlu0 %437 }
 0x2d1   :  { %v445_v43 = vsel %vm932_vm1, %v438_v41, 0.0 }
 0x2d2   :  { %v449_v46 = vadd.f32 %v445_v43, %v431_v38  ;;  %v436_v47 = vpop.permute.xlu1 %435 }
 0x2d3   :  { %v444_v49 = vsel %vm932_vm1, %v436_v47, 0.0 }
 0x2d4   :  { %v458_v51 = vmax.f32 %v449_v46, %v450_v39  ;;  %v448_v48 = vadd.f32 %v444_v49, %v430_v44  ;;  %v434_v52 = vpop.permute.xlu0 %433 }
 0x2d5   :  { %v443_v1 = vsel %vm932_vm1, %v434_v52, 0.0 }
 0x2d6   :  { %v459_v53 = vrot.slane %v458_v51, 4  ;;  %v447_v54 = vadd.f32 %v443_v1, %v429_v50 }
 0x2d8   :  { %v460_v56 = vmax.f32 %v458_v51, %v459_v53  ;;  %v451_v57 = vmax.f32 %v447_v54, %v448_v48 }
 0x2da   :  { %v461_v58 = vrot.slane %v460_v56, 2  ;;  %v452_v59 = vrot.slane %v451_v57, 4 }
 0x2dc   :  { %v462_v55 = vmax.f32 %v460_v56, %v461_v58  ;;  %v453_v61 = vmax.f32 %v451_v57, %v452_v59 }
 0x2de   :  { %v463_v62 = vrot.slane %v462_v55, 1  ;;  %v454_v63 = vrot.slane %v453_v61, 2 }
 0x2e0   :  { %v455_v2 = vmax.f32 %v453_v61, %v454_v63  ;;  %v464_v3 = vmax.f32 %v462_v55, %v463_v62 }
 0x2e2   :  { %v456_v4 = vrot.slane %v455_v2, 1  ;;  %v471_v60 = vadd.f32 %v599_v0, %v464_v3 }
 0x2e4   :  { %v457_v40 = vmax.f32 %v455_v2, %v456_v4  ;;  %v473_v5 = vmax.f32 %v471_v60, 0.0 }
 0x2e6   :  { %v470_v6 = vadd.f32 %v599_v0, %v457_v40  ;;  %v497_v8 = vrot.slane %v473_v5, 7 }
 0x2e8   :  { %v472_v7 = vmax.f32 %v470_v6, 0.0 }
 0x2ea   :  { %v499_v9 = vsel %vm498_vm9, %v497_v8, %v472_v7 }
 0x2eb   :  { %704 = vmatmul.mubr.f32.vlgmr.msra.gmra.mrb[0].mxu1 %v499_v9 }
 0x3be   :  { %v567_v11 = vpop.f32.mrb[0].mxu1 }
 0x3bf   :  { %v568_v12 = vadd.f32 %v600_v10, %v567_v11  ;;  %v705_v13 = vpop.f32.mrb[1].mxu1 }
 0x3c1   :  { %571 = vst [vmem:[#allocation5] sm:$0x3] %v568_v12 }
 0x3c2   :  { %794 = shalt.err (!%p791_p12)
}
 0x3c3   :  { %s795_s13 = scalar_lea.hbm %s1139_s5, 32 }
 0x3c4   :  { %p796_p13 = scmp.ne.s32.totalorder %s1139_s5, %s795_s13  ;;  %p799_p0 = scmp.lt.u32.totalorder %s795_s13, %s1139_s5 }
 0x3c6   :  { %p801_p1 = pnand %p799_p0, %p796_p13 }
 0x3c8   :  { %804 = shalt.err (!%p801_p1)
}
 0x3c9   :  { %581 = dma.vmem_to_hbm [thread:$0]  %s579_s10, 32, %s1139_s5, [#allocation4]  }
 0x3ca   :  { %807 = dma.done.wait [#allocation4], 32  }
 0x3cb   :  { %808 = vsyncadd [#allocation4], 4294967264 }
 0x3cc   :  { %585 = vsyncpa [#allocation3], 1 }
 0x3cd   :  { %586 = vsyncpa [#allocation4], 1 }

</bundles_post_ra>
